<compile_context>
chip_gen: v5e
topology: v5e:2x2
jax: 0.10.0
libtpu: 0.0.40
codegen_flags: <defaults>
</compile_context>

<pallas_src>
import jax
import jax.numpy as jnp
import numpy as np
from jax.experimental import pallas as pl
from jax.experimental.pallas import tpu as pltpu


def _round_up(x: int, m: int) -> int:
    return ((x + m - 1) // m) * m


def _nmse_kernel(scale_ref, pred_ref, tgt_ref, out_ref):
    """Accumulate sum(scale * (pred - target)**2) into the resident (8,128) output."""
    i = pl.program_id(0)

    @pl.when(i == 0)
    def _():
        out_ref[...] = jnp.zeros_like(out_ref)

    d = pred_ref[...].astype(jnp.float32) - tgt_ref[...].astype(jnp.float32)
    contrib = scale_ref[...] * (d * d)              # (B, R, 128) f32, scale broadcast over B
    # (B, R, 128) -> (B*R/8, 8, 128) is a layout-preserving regroup (R % 8 == 0);
    # sum over axis 0 is cross-vreg elementwise adds (pure VPU, no XLU reduce).
    out_ref[...] += contrib.reshape(-1, 8, 128).sum(axis=0)


def normalized_mse_loss(pred, target, feature_variance, weights, *, block_elems=None):
    """Pallas implementation of NormalizedMSELoss.forward.

    pred, target:       (B, N, F)  float32 or bfloat16
    feature_variance:   (F,)       float
    weights:            (N,)       float (cos(lat) per node)
    returns scalar float32 loss.
    """
    B, N, F = pred.shape
    assert target.shape == (B, N, F)
    assert feature_variance.shape == (F,)
    assert weights.shape == (N,)

    L = N * F

    # Fold weights and 1/variance^2 into a single per-element scale; the 1/F of
    # the feature mean is folded into the final denominator (B*N*F).
    scale = (weights[:, None].astype(jnp.float32)
             / (feature_variance[None, :].astype(jnp.float32) ** 2))
    scale = scale.reshape(1, L)

    # Lane-dense block sizing: multiples of 1024 elements (= 8 sublanes x 128
    # lanes), targeting ~2 MiB of f32 per streamed pred/target block.
    if block_elems is None:
        block_elems = (2 * 1024 * 1024) // (4 * B)
    block_elems = max(1024, (block_elems // 1024) * 1024)
    block_elems = min(block_elems, _round_up(L, 1024))

    L_pad = _round_up(L, block_elems)
    pad = L_pad - L

    pred_flat = pred.reshape(B, L)
    tgt_flat = target.reshape(B, L)
    if pad:
        # Padded tail has scale == 0, so it contributes nothing to the sum.
        pred_flat = jnp.pad(pred_flat, ((0, 0), (0, pad)))
        tgt_flat = jnp.pad(tgt_flat, ((0, 0), (0, pad)))
        scale = jnp.pad(scale, ((0, 0), (0, pad)))

    rows = L_pad // 128
    rows_per_block = block_elems // 128           # multiple of 8
    num_blocks = L_pad // block_elems

    pred3 = pred_flat.reshape(B, rows, 128)
    tgt3 = tgt_flat.reshape(B, rows, 128)
    scale3 = scale.reshape(1, rows, 128)

    partial = pl.pallas_call(
        _nmse_kernel,
        out_shape=jax.ShapeDtypeStruct((8, 128), jnp.float32),
        grid=(num_blocks,),
        in_specs=[
            pl.BlockSpec((1, rows_per_block, 128), lambda i: (0, i, 0)),   # folded scale
            pl.BlockSpec((B, rows_per_block, 128), lambda i: (0, i, 0)),   # pred tile
            pl.BlockSpec((B, rows_per_block, 128), lambda i: (0, i, 0)),   # target tile
        ],
        out_specs=pl.BlockSpec((8, 128), lambda i: (0, 0)),
        compiler_params=pltpu.CompilerParams(
            dimension_semantics=("arbitrary",),       # output accumulates across the grid
            vmem_limit_bytes=32 * 1024 * 1024,        # safe on v5e/v6e/v7x for ~2 MiB blocks
        ),
    )(scale3, pred3, tgt3)

    # Tiny final reduce + normalization (by B * N * F, un-padded) in the wrapper.
    return jnp.sum(partial) / jnp.float32(B * N * F)


def normalized_mse_loss_ref(pred, target, feature_variance, weights):
    p = pred / feature_variance
    t = target / feature_variance
    out = (p - t) ** 2
    out = out.mean(-1)
    out = out * weights[None, :]
    return out.mean()


if __name__ == "__main__":
    key = jax.random.PRNGKey(0)

    # Small problem: batch=2, a 16x16 lat/lon grid (256 nodes), 4 features.
    B, F = 2, 4
    n_lat, n_lon = 16, 16
    N = n_lat * n_lon

    lats = np.linspace(-np.pi / 2 * 0.95, np.pi / 2 * 0.95, n_lat)
    lons = np.linspace(0.0, 2.0 * np.pi, n_lon, endpoint=False)
    lat_lons = [(float(la), float(lo)) for la in lats for lo in lons]
    weights = jnp.asarray([np.cos(lat) for lat, _ in lat_lons], dtype=jnp.float32)
    feature_variance = jnp.asarray([0.5, 1.0, 2.0, 4.0], dtype=jnp.float32)

    k1, k2, k3, k4 = jax.random.split(key, 4)
    pred = jax.random.normal(k1, (B, N, F), dtype=jnp.float32)
    target = jax.random.normal(k2, (B, N, F), dtype=jnp.float32)

    # Main f32 check.
    loss = normalized_mse_loss(pred, target, feature_variance, weights)
    loss = jax.block_until_ready(loss)
    ref = normalized_mse_loss_ref(pred, target, feature_variance, weights)
    np.testing.assert_allclose(np.asarray(loss), np.asarray(ref), rtol=1e-5, atol=1e-6)

    # Padding path: N*F not a multiple of 1024 (270 nodes, 5 features -> 1350 elems).
    N2, F2 = 270, 5
    w2 = jnp.abs(jax.random.normal(k3, (N2,), dtype=jnp.float32)) + 0.1
    fv2 = jnp.asarray(np.linspace(0.5, 2.5, F2), dtype=jnp.float32)
    p2 = jax.random.normal(k4, (B, N2, F2), dtype=jnp.float32)
    t2 = jax.random.normal(k1, (B, N2, F2), dtype=jnp.float32)
    loss2 = jax.block_until_ready(normalized_mse_loss(p2, t2, fv2, w2))
    ref2 = normalized_mse_loss_ref(p2, t2, fv2, w2)
    np.testing.assert_allclose(np.asarray(loss2), np.asarray(ref2), rtol=1e-5, atol=1e-6)

    # bf16 inputs are streamed as bf16 and accumulated in f32 inside the kernel.
    pred_bf = pred.astype(jnp.bfloat16)
    target_bf = target.astype(jnp.bfloat16)
    loss_bf = jax.block_until_ready(
        normalized_mse_loss(pred_bf, target_bf, feature_variance, weights)
    )
    ref_bf = normalized_mse_loss_ref(
        pred_bf.astype(jnp.float32), target_bf.astype(jnp.float32),
        feature_variance, weights,
    )
    np.testing.assert_allclose(np.asarray(loss_bf), np.asarray(ref_bf), rtol=1e-4, atol=1e-6)

    print("KERNEL_OK")
</pallas_src>

<mosaic_0001>
module attributes {stable_mosaic.version = 11 : i64} {
  func.func @_nmse_kernel(%arg0: i32, %arg1: memref<1x8x128xf32, #tpu.memory_space<vmem>>, %arg2: memref<2x8x128xf32, #tpu.memory_space<vmem>>, %arg3: memref<2x8x128xf32, #tpu.memory_space<vmem>>, %arg4: memref<8x128xf32, #tpu.memory_space<vmem>>) attributes {dimension_semantics = [#tpu.dimension_semantics<arbitrary>], iteration_bounds = array<i64: 1>, scalar_prefetch = 0 : i64, scratch_operands = 0 : i64, tpu.core_type = #tpu.core_type<tc>, window_params = [{transform_indices = @transform_0, window_bounds = array<i64: 1, 8, 128>}, {transform_indices = @transform_1, window_bounds = array<i64: 2, 8, 128>}, {transform_indices = @transform_2, window_bounds = array<i64: 2, 8, 128>}, {pipeline_mode = #tpu.pipeline_mode<synchronous>, transform_indices = @transform_3, window_bounds = array<i64: 8, 128>}]} {
    %c0_i32 = arith.constant 0 : i32
    %0 = arith.cmpi eq, %arg0, %c0_i32 : i32
    %1 = arith.extui %0 : i1 to i32
    %c0_i32_0 = arith.constant 0 : i32
    %2 = arith.cmpi ne, %1, %c0_i32_0 : i32
    scf.if %2 {
      %cst_13 = arith.constant 0.000000e+00 : f32
      %14 = vector.broadcast %cst_13 : f32 to vector<8x128xf32>
      %c0_14 = arith.constant 0 : index
      %c0_15 = arith.constant 0 : index
      %15 = vector.load %arg4[%c0_14, %c0_15] : memref<8x128xf32, #tpu.memory_space<vmem>>, vector<8x128xf32>
      tpu.vector_store %arg4[%c0_14, %c0_15], %14 {strides = array<i32>} : memref<8x128xf32, #tpu.memory_space<vmem>>, vector<8x128xf32>,
    } else {
    }
    %c0 = arith.constant 0 : index
    %c0_1 = arith.constant 0 : index
    %c0_2 = arith.constant 0 : index
    %3 = vector.load %arg2[%c0, %c0_1, %c0_2] : memref<2x8x128xf32, #tpu.memory_space<vmem>>, vector<2x8x128xf32>
    %c0_3 = arith.constant 0 : index
    %c0_4 = arith.constant 0 : index
    %c0_5 = arith.constant 0 : index
    %4 = vector.load %arg3[%c0_3, %c0_4, %c0_5] : memref<2x8x128xf32, #tpu.memory_space<vmem>>, vector<2x8x128xf32>
    %5 = arith.subf %3, %4 : vector<2x8x128xf32>
    %c0_6 = arith.constant 0 : index
    %c0_7 = arith.constant 0 : index
    %c0_8 = arith.constant 0 : index
    %6 = vector.load %arg1[%c0_6, %c0_7, %c0_8] : memref<1x8x128xf32, #tpu.memory_space<vmem>>, vector<1x8x128xf32>
    %7 = arith.mulf %5, %5 : vector<2x8x128xf32>
    %8 = vector.broadcast %6 : vector<1x8x128xf32> to vector<2x8x128xf32>
    %9 = arith.mulf %8, %7 : vector<2x8x128xf32>
    %c0_9 = arith.constant 0 : index
    %c0_10 = arith.constant 0 : index
    %10 = vector.load %arg4[%c0_9, %c0_10] : memref<8x128xf32, #tpu.memory_space<vmem>>, vector<8x128xf32>
    %cst = arith.constant dense<0.000000e+00> : vector<8x128xf32>
    %11 = vector.multi_reduction <add>, %9, %cst [0] : vector<2x8x128xf32> to vector<8x128xf32>
    %12 = arith.addf %10, %11 : vector<8x128xf32>
    %c0_11 = arith.constant 0 : index
    %c0_12 = arith.constant 0 : index
    %13 = vector.load %arg4[%c0_11, %c0_12] : memref<8x128xf32, #tpu.memory_space<vmem>>, vector<8x128xf32>
    tpu.vector_store %arg4[%c0_11, %c0_12], %12 {strides = array<i32>} : memref<8x128xf32, #tpu.memory_space<vmem>>, vector<8x128xf32>,
    return
  }
  func.func @transform_0(%arg0: i32) -> (i32, i32, i32) {
    %c0_i32 = arith.constant 0 : i32
    %c0_i32_0 = arith.constant 0 : i32
    %c0_i32_1 = arith.constant 0 : i32
    return %c0_i32, %arg0, %c0_i32_0 : i32, i32, i32
  }
  func.func @transform_1(%arg0: i32) -> (i32, i32, i32) {
    %c0_i32 = arith.constant 0 : i32
    %c0_i32_0 = arith.constant 0 : i32
    %c0_i32_1 = arith.constant 0 : i32
    return %c0_i32, %arg0, %c0_i32_0 : i32, i32, i32
  }
  func.func @transform_2(%arg0: i32) -> (i32, i32, i32) {
    %c0_i32 = arith.constant 0 : i32
    %c0_i32_0 = arith.constant 0 : i32
    %c0_i32_1 = arith.constant 0 : i32
    return %c0_i32, %arg0, %c0_i32_0 : i32, i32, i32
  }
  func.func @transform_3(%arg0: i32) -> (i32, i32) {
    %c0_i32 = arith.constant 0 : i32
    %c0_i32_0 = arith.constant 0 : i32
    %c0_i32_1 = arith.constant 0 : i32
    return %c0_i32, %c0_i32_0 : i32, i32
  }
}

</mosaic_0001>

<bundles_post_ra>
// kernel: tpu_custom_call.1
= control target key start
LH: loop header
LB: loop body
LE: loop exit
PB: predicated region body
PF: predicated region fallthrough
CT: control target
= control target key end

     0   :  { %8 = vsyncpa [#allocation3], 0  ;;  %s245_s0 = inlined_call_operand.hbm [shape: f32[1,8,128], index: 0, kind: input, shape index: {}]   ;;  %s246_s1 = inlined_call_operand.hbm [shape: f32[2,8,128], index: 1, kind: input, shape index: {}]   ;;  %s247_s2 = inlined_call_operand.hbm [shape: f32[2,8,128], index: 2, kind: input, shape index: {}]   ;;  %s248_s3 = inlined_call_operand.hbm [shape: f32[8,128], index: 3, kind: output, shape index: {}]  }
   0x1   :  { %9 = vsyncpa [#allocation6], 0  ;;  %s26_s14 = sshll.u32 %s246_s1, 4  ;;  %s27_s14 = int_to_ptr.hbm [resolvable:$true] %s26_s14 }
   0x2   :  { %10 = vsyncpa [#allocation4], 0  ;;  %s207_s15 = smov [#allocation5]   ;;  %s16_s19 = sshll.u32 %s245_s0, 4  ;;  %s17_s19 = int_to_ptr.hbm [resolvable:$true] %s16_s19 }
   0x3   :  { %s28_s16 = sshll.u32 %s207_s15, 4  ;;  %s208_s20 = smov 128   ;;  %s29_s16 = int_to_ptr.vmem [resolvable:$true] %s28_s16 }
   0x4   :  { %s209_s21 = smov 8   ;;  %s210_s22 = smov [#allocation2]  }
   0x5   :  { %34 = dma.hbm_to_vmem [thread:$0]  %s27_s14, 256, %s29_s16, [#allocation6], %s208_s20, %s208_s20, %s209_s21  }
   0x6   :  { %s18_s23 = sshll.u32 %s210_s22, 4  ;;  %s39_s26 = sshll.u32 %s247_s2, 4  ;;  %s19_s23 = int_to_ptr.vmem [resolvable:$true] %s18_s23  ;;  %s40_s26 = int_to_ptr.hbm [resolvable:$true] %s39_s26 }
   0x7   :  { %21 = dma.hbm_to_vmem [thread:$0]  %s17_s19, 128, %s19_s23, [#allocation3]  }
   0x8   :  { %s211_s1 = smov [#allocation7]  }
   0x9   :  { %s41_s27 = sshll.u32 %s211_s1, 4  ;;  %s42_s27 = int_to_ptr.vmem [resolvable:$true] %s41_s27 }
   0xa   :  { %47 = dma.hbm_to_vmem [thread:$0]  %s40_s26, 256, %s42_s27, [#allocation6], %s208_s20, %s208_s20, %s209_s21  }
   0xb   :  { %201 = dma.done.wait [#allocation3], 128  }
   0xc   :  { %202 = vsyncadd [#allocation3], 4294967168 }
   0xd   :  { %203 = dma.done.wait [#allocation6], 512  }
   0xe   :  { %204 = vsyncadd [#allocation6], 4294966784  ;;  %v65_v0 = vld [vmem:[#allocation5] sm:$0xff]  ;;  %v66_v1 = vld [vmem:[#allocation5 + $0x8] sm:$0xff]  ;;  %s212_s0 = smov [#allocation8]   ;;  %s87_s30 = sshll.u32 %s248_s3, 4  ;;  %s88_s30 = int_to_ptr.hbm [resolvable:$true] %s87_s30 }
   0xf   :  { %v67_v2 = vld [vmem:[#allocation7] sm:$0xff]  ;;  %v68_v3 = vld [vmem:[#allocation7 + $0x8] sm:$0xff]  ;;  %s85_s2 = sshll.u32 %s212_s0, 4  ;;  %s86_s2 = int_to_ptr.vmem [resolvable:$true] %s85_s2 }
  0x10   :  { %v69_v4 = vsub.f32 %v65_v0, %v67_v2  ;;  %v70_v5 = vsub.f32 %v66_v1, %v68_v3  ;;  %v71_v6 = vld [vmem:[#allocation2] sm:$0xff] }
  0x12   :  { %v72_v7 = vmul.f32 %v69_v4, %v69_v4  ;;  %v73_v8 = vmul.f32 %v70_v5, %v70_v5 }
  0x14   :  { %v74_v9 = vmul.f32 %v72_v7, %v71_v6  ;;  %v75_v10 = vmul.f32 %v73_v8, %v71_v6 }
  0x16   :  { %v77_v11 = vadd.f32 %v75_v10, %v74_v9 }
  0x18   :  { %79 = vst [vmem:[#allocation8] sm:$0xff] %v77_v11 }
  0x19   :  { %90 = dma.vmem_to_hbm [thread:$0]  %s86_s2, 128, %s88_s30, [#allocation4]  }
  0x1a   :  { %205 = dma.done.wait [#allocation4], 128  }
  0x1b   :  { %206 = vsyncadd [#allocation4], 4294967168 }
  0x1c   :  { %95 = vsyncpa [#allocation3], 1 }
  0x1d   :  { %96 = vsyncpa [#allocation6], 1 }
  0x1e   :  { %97 = vsyncpa [#allocation4], 1 }

</bundles_post_ra>
